<compile_context>
chip_gen: v7x
topology: tpu7x:2x2x1
jax: 0.10.0
libtpu: 0.0.40
codegen_flags: <defaults>
</compile_context>

<pallas_src>
import functools

import jax
import jax.numpy as jnp
from jax import lax
from jax.experimental import pallas as pl
from jax.experimental.pallas import tpu as pltpu


def lstm_classifier_kernel(x_ref, w_ih_ref, w_hh_ref, b_ref,
                           w_out_ref, b_out_ref, out_ref,
                           h_scr, c_scr, *, hidden_dim):
    """One grid step processes one (T_tile, B, E) chunk of the sequence.

    x_ref:     (T_tile, B, E)  embedded chunk
    w_ih_ref:  (E, 4H)   input->gates weights, gate columns in [i, f, o, g]
    w_hh_ref:  (H, 4H)   hidden->gates weights, same column order
    b_ref:     (1, 4H)   combined bias (b_ih + b_hh), same column order
    w_out_ref: (H, Lp)   hidden2label weight, label dim padded to 128 lanes
    b_out_ref: (1, Lp)   hidden2label bias, padded columns set to -1e30
    out_ref:   (B, Lp)   log_softmax output (written only on last grid step)
    h_scr/c_scr: (B, H)  recurrent state; persists across grid steps
    """
    H = hidden_dim
    t_tile, B, E = x_ref.shape

    @pl.when(pl.program_id(0) == 0)
    def _init():
        # matches init_hidden(): zero h0/c0, only on the first time-chunk
        h_scr[...] = jnp.zeros_like(h_scr)
        c_scr[...] = jnp.zeros_like(c_scr)

    # ---- Phase 1: hoisted, time-independent input projection --------------
    # One (T_tile*B, E) x (E, 4H) matmul + one bias add for the whole tile
    # instead of a tiny matmul + broadcast on every serial timestep.
    x_flat = x_ref[...].reshape(t_tile * B, E)
    xw = (jnp.dot(x_flat, w_ih_ref[...], preferred_element_type=jnp.float32)
          + b_ref[...]).reshape(t_tile, B, 4 * H)      # gate order [i, f, o, g]

    # ---- Phase 2: serial recurrence (only h @ W_hh on the critical path) --
    w_hh = w_hh_ref[...]
    h = h_scr[...]
    c = c_scr[...]
    for t in range(t_tile):                 # static trip count -> fully unrolled
        gates = xw[t] + jnp.dot(h, w_hh, preferred_element_type=jnp.float32)
        sig = jax.nn.sigmoid(gates[:, :3 * H])   # [i | f | o] in one EUP pass
        g_g = jnp.tanh(gates[:, 3 * H:])         # g
        i_g = sig[:, :H]
        f_g = sig[:, H:2 * H]
        o_g = sig[:, 2 * H:3 * H]
        c = f_g * c + i_g * g_g
        h = o_g * jnp.tanh(c)
    h_scr[...] = h
    c_scr[...] = c

    # ---- Phase 3: classifier head + log_softmax (last grid step only) -----
    @pl.when(pl.program_id(0) == pl.num_programs(0) - 1)
    def _head():
        # Padded label columns carry bias -1e30 -> exp underflows to exactly 0,
        # so the log_softmax over the real labels is untouched.
        y = (jnp.dot(h, w_out_ref[...], preferred_element_type=jnp.float32)
             + b_out_ref[...])                       # (B, Lp), lane-dense
        y_max = jnp.max(y, axis=1, keepdims=True)
        shifted = y - y_max
        lse = jnp.log(jnp.sum(jnp.exp(shifted), axis=1, keepdims=True))
        out_ref[...] = shifted - lse


def _largest_divisor_at_most(n, cap):
    for d in range(min(n, cap), 0, -1):
        if n % d == 0:
            return d
    return 1


def lstm_classifier_forward(sentence, emb_table, w_ih, w_hh, b_ih, b_hh,
                            w_label, b_label, *, max_t_tile=8):
    """Glue: embedding gather + weight prep, then the gridded Pallas kernel."""
    seq_len, batch = sentence.shape
    embed_dim = emb_table.shape[1]
    hidden_dim = w_hh.shape[1]
    label_size = w_label.shape[0]

    # nn.Embedding lookup + .view(len(sentence), batch, -1)  (plain-JAX gather)
    x = emb_table[sentence].reshape(seq_len, batch, embed_dim).astype(jnp.float32)

    # Pre-transpose weights to (in, 4H)/(H, 4H) and permute gate columns
    # from PyTorch's [i, f, g, o] to [i, f, o, g] (kernel slices match this).
    def reorder(w):
        hh = w.shape[-1] // 4
        return jnp.concatenate(
            [w[..., :2 * hh], w[..., 3 * hh:], w[..., 2 * hh:3 * hh]], axis=-1)

    w_ih_t = reorder(jnp.transpose(w_ih))             # (E, 4H)
    w_hh_t = reorder(jnp.transpose(w_hh))             # (H, 4H)
    b = reorder((b_ih + b_hh).reshape(1, -1))         # (1, 4H)
    # TODO(synk): optionally cast w_ih_t/w_hh_t (and x) to bfloat16 on v6e/v7x
    # with f32 accumulation; kept f32 here to preserve 1e-5 parity with torch.

    # Lane-dense classifier head: pad label dim up to a multiple of 128.
    lp = max(128, ((label_size + 127) // 128) * 128)
    w_out_t = jnp.zeros((hidden_dim, lp), jnp.float32).at[:, :label_size].set(
        jnp.transpose(w_label))
    b_out = jnp.full((1, lp), -1e30, jnp.float32).at[0, :label_size].set(b_label)

    t_tile = _largest_divisor_at_most(seq_len, max_t_tile)
    num_tiles = seq_len // t_tile

    kernel = functools.partial(lstm_classifier_kernel, hidden_dim=hidden_dim)

    out = pl.pallas_call(
        kernel,
        out_shape=jax.ShapeDtypeStruct((batch, lp), jnp.float32),
        grid_spec=pltpu.PrefetchScalarGridSpec(
            num_scalar_prefetch=0,
            grid=(num_tiles,),
            in_specs=[
                # x streamed by time tile (auto double-buffered DMA)
                pl.BlockSpec((t_tile, batch, embed_dim), lambda t: (t, 0, 0)),
                # weights / biases resident across the whole grid
                pl.BlockSpec((embed_dim, 4 * hidden_dim), lambda t: (0, 0)),
                pl.BlockSpec((hidden_dim, 4 * hidden_dim), lambda t: (0, 0)),
                pl.BlockSpec((1, 4 * hidden_dim), lambda t: (0, 0)),
                pl.BlockSpec((hidden_dim, lp), lambda t: (0, 0)),
                pl.BlockSpec((1, lp), lambda t: (0, 0)),
            ],
            out_specs=pl.BlockSpec((batch, lp), lambda t: (0, 0)),
            scratch_shapes=[
                pltpu.VMEM((batch, hidden_dim), jnp.float32),   # h
                pltpu.VMEM((batch, hidden_dim), jnp.float32),   # c
            ],
        ),
        compiler_params=pltpu.CompilerParams(
            dimension_semantics=("arbitrary",),   # time axis is serial
        ),
    )(x, w_ih_t, w_hh_t, b, w_out_t, b_out)
    return out[:, :label_size]


def reference_forward(sentence, emb_table, w_ih, w_hh, b_ih, b_hh,
                      w_label, b_label):
    """Pure-JAX reference mirroring the PyTorch forward (for validation)."""
    seq_len, batch = sentence.shape
    H = w_hh.shape[1]
    x = emb_table[sentence].reshape(seq_len, batch, -1).astype(jnp.float32)
    h = jnp.zeros((batch, H), jnp.float32)
    c = jnp.zeros((batch, H), jnp.float32)
    for t in range(seq_len):
        gates = x[t] @ w_ih.T + b_ih + h @ w_hh.T + b_hh
        i_g = jax.nn.sigmoid(gates[:, 0:H])
        f_g = jax.nn.sigmoid(gates[:, H:2 * H])
        g_g = jnp.tanh(gates[:, 2 * H:3 * H])
        o_g = jax.nn.sigmoid(gates[:, 3 * H:4 * H])
        c = f_g * c + i_g * g_g
        h = o_g * jnp.tanh(c)
    y = h @ w_label.T + b_label
    return jax.nn.log_softmax(y, axis=1)


if __name__ == "__main__":
    # small shapes consistent with the module's __init__
    vocab_size = 50
    embedding_dim = 16
    hidden_dim = 32
    label_size = 4
    batch_size = 2
    seq_len = 8

    key = jax.random.PRNGKey(0)
    ks = jax.random.split(key, 8)
    scale = 1.0 / jnp.sqrt(hidden_dim)

    emb_table = jax.random.normal(ks[0], (vocab_size, embedding_dim), jnp.float32)
    w_ih = jax.random.uniform(ks[1], (4 * hidden_dim, embedding_dim),
                              jnp.float32, -scale, scale)
    w_hh = jax.random.uniform(ks[2], (4 * hidden_dim, hidden_dim),
                              jnp.float32, -scale, scale)
    b_ih = jax.random.uniform(ks[3], (4 * hidden_dim,), jnp.float32, -scale, scale)
    b_hh = jax.random.uniform(ks[4], (4 * hidden_dim,), jnp.float32, -scale, scale)
    w_label = jax.random.uniform(ks[5], (label_size, hidden_dim),
                                 jnp.float32, -scale, scale)
    b_label = jax.random.uniform(ks[6], (label_size,), jnp.float32, -scale, scale)

    sentence = jax.random.randint(ks[7], (seq_len, batch_size), 0, vocab_size,
                                  dtype=jnp.int32)

    # max_t_tile=4 -> grid=(2,): exercises scratch persistence, init on step 0
    # and head/output write on the last step.
    log_probs = lstm_classifier_forward(sentence, emb_table, w_ih, w_hh,
                                        b_ih, b_hh, w_label, b_label,
                                        max_t_tile=4)
    log_probs = jax.block_until_ready(log_probs)

    ref = reference_forward(sentence, emb_table, w_ih, w_hh, b_ih, b_hh,
                            w_label, b_label)
    assert log_probs.shape == (batch_size, label_size)
    assert jnp.allclose(log_probs, ref, atol=1e-5, rtol=1e-5), (log_probs, ref)

    print("KERNEL_OK")
</pallas_src>

<mosaic_0001>
module attributes {stable_mosaic.version = 11 : i64} {
  func.func @lstm_classifier_kernel(%arg0: i32, %arg1: memref<4x2x16xf32, #tpu.memory_space<vmem>>, %arg2: memref<16x128xf32, #tpu.memory_space<vmem>>, %arg3: memref<32x128xf32, #tpu.memory_space<vmem>>, %arg4: memref<1x128xf32, #tpu.memory_space<vmem>>, %arg5: memref<32x128xf32, #tpu.memory_space<vmem>>, %arg6: memref<1x128xf32, #tpu.memory_space<vmem>>, %arg7: memref<2x128xf32, #tpu.memory_space<vmem>>, %arg8: memref<2x32xf32, #tpu.memory_space<vmem>>, %arg9: memref<2x32xf32, #tpu.memory_space<vmem>>) attributes {dimension_semantics = [#tpu.dimension_semantics<arbitrary>], iteration_bounds = array<i64: 2>, scalar_prefetch = 0 : i64, scratch_operands = 2 : i64, tpu.core_type = #tpu.core_type<tc>, window_params = [{transform_indices = @transform_0, window_bounds = array<i64: 4, 2, 16>}, {pipeline_mode = #tpu.pipeline_mode<synchronous>, transform_indices = @transform_1, window_bounds = array<i64: 16, 128>}, {pipeline_mode = #tpu.pipeline_mode<synchronous>, transform_indices = @transform_2, window_bounds = array<i64: 32, 128>}, {pipeline_mode = #tpu.pipeline_mode<synchronous>, transform_indices = @transform_3, window_bounds = array<i64: 1, 128>}, {pipeline_mode = #tpu.pipeline_mode<synchronous>, transform_indices = @transform_4, window_bounds = array<i64: 32, 128>}, {pipeline_mode = #tpu.pipeline_mode<synchronous>, transform_indices = @transform_5, window_bounds = array<i64: 1, 128>}, {pipeline_mode = #tpu.pipeline_mode<synchronous>, transform_indices = @transform_6, window_bounds = array<i64: 2, 128>}]} {
    %c0_i32 = arith.constant 0 : i32
    %0 = arith.cmpi eq, %arg0, %c0_i32 : i32
    %1 = arith.extui %0 : i1 to i32
    %c0_i32_0 = arith.constant 0 : i32
    %2 = arith.cmpi ne, %1, %c0_i32_0 : i32
    scf.if %2 {
      %cst_26 = arith.constant 0.000000e+00 : f32
      %99 = vector.broadcast %cst_26 : f32 to vector<2x32xf32>
      %c0_27 = arith.constant 0 : index
      %c0_28 = arith.constant 0 : index
      %100 = vector.load %arg8[%c0_27, %c0_28] : memref<2x32xf32, #tpu.memory_space<vmem>>, vector<2x32xf32>
      tpu.vector_store %arg8[%c0_27, %c0_28], %99 {strides = array<i32>} : memref<2x32xf32, #tpu.memory_space<vmem>>, vector<2x32xf32>,
      %cst_29 = arith.constant 0.000000e+00 : f32
      %101 = vector.broadcast %cst_29 : f32 to vector<2x32xf32>
      %c0_30 = arith.constant 0 : index
      %c0_31 = arith.constant 0 : index
      %102 = vector.load %arg9[%c0_30, %c0_31] : memref<2x32xf32, #tpu.memory_space<vmem>>, vector<2x32xf32>
      tpu.vector_store %arg9[%c0_30, %c0_31], %101 {strides = array<i32>} : memref<2x32xf32, #tpu.memory_space<vmem>>, vector<2x32xf32>,
    } else {
    }
    %c0 = arith.constant 0 : index
    %c0_1 = arith.constant 0 : index
    %c0_2 = arith.constant 0 : index
    %3 = vector.load %arg1[%c0, %c0_1, %c0_2] : memref<4x2x16xf32, #tpu.memory_space<vmem>>, vector<4x2x16xf32>
    %4 = vector.shape_cast %3 : vector<4x2x16xf32> to vector<8x16xf32>
    %c0_3 = arith.constant 0 : index
    %c0_4 = arith.constant 0 : index
    %5 = vector.load %arg2[%c0_3, %c0_4] : memref<16x128xf32, #tpu.memory_space<vmem>>, vector<16x128xf32>
    %cst = arith.constant dense<0.000000e+00> : vector<8x128xf32>
    %6 = tpu.matmul %4, %5, %cst {dimension_numbers = #tpu.dot_dimension_numbers<[1], [0], [0], [1], [0, 0, 1, 1], [], []>} : vector<8x16xf32>, vector<16x128xf32>, vector<8x128xf32> -> vector<8x128xf32>
    %c0_5 = arith.constant 0 : index
    %c0_6 = arith.constant 0 : index
    %7 = vector.load %arg4[%c0_5, %c0_6] : memref<1x128xf32, #tpu.memory_space<vmem>>, vector<1x128xf32>
    %8 = vector.broadcast %7 : vector<1x128xf32> to vector<8x128xf32>
    %9 = arith.addf %6, %8 : vector<8x128xf32>
    %10 = vector.shape_cast %9 : vector<8x128xf32> to vector<4x2x128xf32>
    %c0_7 = arith.constant 0 : index
    %c0_8 = arith.constant 0 : index
    %11 = vector.load %arg3[%c0_7, %c0_8] : memref<32x128xf32, #tpu.memory_space<vmem>>, vector<32x128xf32>
    %c0_9 = arith.constant 0 : index
    %c0_10 = arith.constant 0 : index
    %12 = vector.load %arg8[%c0_9, %c0_10] : memref<2x32xf32, #tpu.memory_space<vmem>>, vector<2x32xf32>
    %c0_11 = arith.constant 0 : index
    %c0_12 = arith.constant 0 : index
    %13 = vector.load %arg9[%c0_11, %c0_12] : memref<2x32xf32, #tpu.memory_space<vmem>>, vector<2x32xf32>
    %14 = vector.extract_strided_slice %10 {offsets = [0, 0, 0], sizes = [1, 2, 128], strides = [1, 1, 1]} : vector<4x2x128xf32> to vector<1x2x128xf32>
    %15 = vector.shape_cast %14 : vector<1x2x128xf32> to vector<2x128xf32>
    %cst_13 = arith.constant dense<0.000000e+00> : vector<2x128xf32>
    %16 = tpu.matmul %12, %11, %cst_13 {dimension_numbers = #tpu.dot_dimension_numbers<[1], [0], [0], [1], [0, 0, 1, 1], [], []>} : vector<2x32xf32>, vector<32x128xf32>, vector<2x128xf32> -> vector<2x128xf32>
    %17 = arith.addf %15, %16 : vector<2x128xf32>
    %18 = vector.extract_strided_slice %17 {offsets = [0, 0], sizes = [2, 96], strides = [1, 1]} : vector<2x128xf32> to vector<2x96xf32>
    %19 = arith.negf %18 : vector<2x96xf32>
    %20 = math.exp %19 : vector<2x96xf32>
    %cst_14 = arith.constant 1.000000e+00 : f32
    %21 = vector.broadcast %cst_14 : f32 to vector<2x96xf32>
    %22 = arith.addf %21, %20 : vector<2x96xf32>
    %23 = arith.divf %21, %22 : vector<2x96xf32>
    %24 = vector.extract_strided_slice %17 {offsets = [0, 96], sizes = [2, 32], strides = [1, 1]} : vector<2x128xf32> to vector<2x32xf32>
    %25 = math.tanh %24 : vector<2x32xf32>
    %26 = vector.extract_strided_slice %23 {offsets = [0, 0], sizes = [2, 32], strides = [1, 1]} : vector<2x96xf32> to vector<2x32xf32>
    %27 = vector.extract_strided_slice %23 {offsets = [0, 32], sizes = [2, 32], strides = [1, 1]} : vector<2x96xf32> to vector<2x32xf32>
    %28 = vector.extract_strided_slice %23 {offsets = [0, 64], sizes = [2, 32], strides = [1, 1]} : vector<2x96xf32> to vector<2x32xf32>
    %29 = arith.mulf %27, %13 : vector<2x32xf32>
    %30 = arith.mulf %26, %25 : vector<2x32xf32>
    %31 = arith.addf %29, %30 : vector<2x32xf32>
    %32 = math.tanh %31 : vector<2x32xf32>
    %33 = arith.mulf %28, %32 : vector<2x32xf32>
    %34 = vector.extract_strided_slice %10 {offsets = [1, 0, 0], sizes = [1, 2, 128], strides = [1, 1, 1]} : vector<4x2x128xf32> to vector<1x2x128xf32>
    %35 = vector.shape_cast %34 : vector<1x2x128xf32> to vector<2x128xf32>
    %cst_15 = arith.constant dense<0.000000e+00> : vector<2x128xf32>
    %36 = tpu.matmul %33, %11, %cst_15 {dimension_numbers = #tpu.dot_dimension_numbers<[1], [0], [0], [1], [0, 0, 1, 1], [], []>} : vector<2x32xf32>, vector<32x128xf32>, vector<2x128xf32> -> vector<2x128xf32>
    %37 = arith.addf %35, %36 : vector<2x128xf32>
    %38 = vector.extract_strided_slice %37 {offsets = [0, 0], sizes = [2, 96], strides = [1, 1]} : vector<2x128xf32> to vector<2x96xf32>
    %39 = arith.negf %38 : vector<2x96xf32>
    %40 = math.exp %39 : vector<2x96xf32>
    %cst_16 = arith.constant 1.000000e+00 : f32
    %41 = vector.broadcast %cst_16 : f32 to vector<2x96xf32>
    %42 = arith.addf %41, %40 : vector<2x96xf32>
    %43 = arith.divf %41, %42 : vector<2x96xf32>
    %44 = vector.extract_strided_slice %37 {offsets = [0, 96], sizes = [2, 32], strides = [1, 1]} : vector<2x128xf32> to vector<2x32xf32>
    %45 = math.tanh %44 : vector<2x32xf32>
    %46 = vector.extract_strided_slice %43 {offsets = [0, 0], sizes = [2, 32], strides = [1, 1]} : vector<2x96xf32> to vector<2x32xf32>
    %47 = vector.extract_strided_slice %43 {offsets = [0, 32], sizes = [2, 32], strides = [1, 1]} : vector<2x96xf32> to vector<2x32xf32>
    %48 = vector.extract_strided_slice %43 {offsets = [0, 64], sizes = [2, 32], strides = [1, 1]} : vector<2x96xf32> to vector<2x32xf32>
    %49 = arith.mulf %47, %31 : vector<2x32xf32>
    %50 = arith.mulf %46, %45 : vector<2x32xf32>
    %51 = arith.addf %49, %50 : vector<2x32xf32>
    %52 = math.tanh %51 : vector<2x32xf32>
    %53 = arith.mulf %48, %52 : vector<2x32xf32>
    %54 = vector.extract_strided_slice %10 {offsets = [2, 0, 0], sizes = [1, 2, 128], strides = [1, 1, 1]} : vector<4x2x128xf32> to vector<1x2x128xf32>
    %55 = vector.shape_cast %54 : vector<1x2x128xf32> to vector<2x128xf32>
    %cst_17 = arith.constant dense<0.000000e+00> : vector<2x128xf32>
    %56 = tpu.matmul %53, %11, %cst_17 {dimension_numbers = #tpu.dot_dimension_numbers<[1], [0], [0], [1], [0, 0, 1, 1], [], []>} : vector<2x32xf32>, vector<32x128xf32>, vector<2x128xf32> -> vector<2x128xf32>
    %57 = arith.addf %55, %56 : vector<2x128xf32>
    %58 = vector.extract_strided_slice %57 {offsets = [0, 0], sizes = [2, 96], strides = [1, 1]} : vector<2x128xf32> to vector<2x96xf32>
    %59 = arith.negf %58 : vector<2x96xf32>
    %60 = math.exp %59 : vector<2x96xf32>
    %cst_18 = arith.constant 1.000000e+00 : f32
    %61 = vector.broadcast %cst_18 : f32 to vector<2x96xf32>
    %62 = arith.addf %61, %60 : vector<2x96xf32>
    %63 = arith.divf %61, %62 : vector<2x96xf32>
    %64 = vector.extract_strided_slice %57 {offsets = [0, 96], sizes = [2, 32], strides = [1, 1]} : vector<2x128xf32> to vector<2x32xf32>
    %65 = math.tanh %64 : vector<2x32xf32>
    %66 = vector.extract_strided_slice %63 {offsets = [0, 0], sizes = [2, 32], strides = [1, 1]} : vector<2x96xf32> to vector<2x32xf32>
    %67 = vector.extract_strided_slice %63 {offsets = [0, 32], sizes = [2, 32], strides = [1, 1]} : vector<2x96xf32> to vector<2x32xf32>
    %68 = vector.extract_strided_slice %63 {offsets = [0, 64], sizes = [2, 32], strides = [1, 1]} : vector<2x96xf32> to vector<2x32xf32>
    %69 = arith.mulf %67, %51 : vector<2x32xf32>
    %70 = arith.mulf %66, %65 : vector<2x32xf32>
    %71 = arith.addf %69, %70 : vector<2x32xf32>
    %72 = math.tanh %71 : vector<2x32xf32>
    %73 = arith.mulf %68, %72 : vector<2x32xf32>
    %74 = vector.extract_strided_slice %10 {offsets = [3, 0, 0], sizes = [1, 2, 128], strides = [1, 1, 1]} : vector<4x2x128xf32> to vector<1x2x128xf32>
    %75 = vector.shape_cast %74 : vector<1x2x128xf32> to vector<2x128xf32>
    %cst_19 = arith.constant dense<0.000000e+00> : vector<2x128xf32>
    %76 = tpu.matmul %73, %11, %cst_19 {dimension_numbers = #tpu.dot_dimension_numbers<[1], [0], [0], [1], [0, 0, 1, 1], [], []>} : vector<2x32xf32>, vector<32x128xf32>, vector<2x128xf32> -> vector<2x128xf32>
    %77 = arith.addf %75, %76 : vector<2x128xf32>
    %78 = vector.extract_strided_slice %77 {offsets = [0, 0], sizes = [2, 96], strides = [1, 1]} : vector<2x128xf32> to vector<2x96xf32>
    %79 = arith.negf %78 : vector<2x96xf32>
    %80 = math.exp %79 : vector<2x96xf32>
    %cst_20 = arith.constant 1.000000e+00 : f32
    %81 = vector.broadcast %cst_20 : f32 to vector<2x96xf32>
    %82 = arith.addf %81, %80 : vector<2x96xf32>
    %83 = arith.divf %81, %82 : vector<2x96xf32>
    %84 = vector.extract_strided_slice %77 {offsets = [0, 96], sizes = [2, 32], strides = [1, 1]} : vector<2x128xf32> to vector<2x32xf32>
    %85 = math.tanh %84 : vector<2x32xf32>
    %86 = vector.extract_strided_slice %83 {offsets = [0, 0], sizes = [2, 32], strides = [1, 1]} : vector<2x96xf32> to vector<2x32xf32>
    %87 = vector.extract_strided_slice %83 {offsets = [0, 32], sizes = [2, 32], strides = [1, 1]} : vector<2x96xf32> to vector<2x32xf32>
    %88 = vector.extract_strided_slice %83 {offsets = [0, 64], sizes = [2, 32], strides = [1, 1]} : vector<2x96xf32> to vector<2x32xf32>
    %89 = arith.mulf %87, %71 : vector<2x32xf32>
    %90 = arith.mulf %86, %85 : vector<2x32xf32>
    %91 = arith.addf %89, %90 : vector<2x32xf32>
    %92 = math.tanh %91 : vector<2x32xf32>
    %93 = arith.mulf %88, %92 : vector<2x32xf32>
    %c0_21 = arith.constant 0 : index
    %c0_22 = arith.constant 0 : index
    %94 = vector.load %arg8[%c0_21, %c0_22] : memref<2x32xf32, #tpu.memory_space<vmem>>, vector<2x32xf32>
    tpu.vector_store %arg8[%c0_21, %c0_22], %93 {strides = array<i32>} : memref<2x32xf32, #tpu.memory_space<vmem>>, vector<2x32xf32>,
    %c0_23 = arith.constant 0 : index
    %c0_24 = arith.constant 0 : index
    %95 = vector.load %arg9[%c0_23, %c0_24] : memref<2x32xf32, #tpu.memory_space<vmem>>, vector<2x32xf32>
    tpu.vector_store %arg9[%c0_23, %c0_24], %91 {strides = array<i32>} : memref<2x32xf32, #tpu.memory_space<vmem>>, vector<2x32xf32>,
    %c1_i32 = arith.constant 1 : i32
    %96 = arith.cmpi eq, %arg0, %c1_i32 : i32
    %97 = arith.extui %96 : i1 to i32
    %c0_i32_25 = arith.constant 0 : i32
    %98 = arith.cmpi ne, %97, %c0_i32_25 : i32
    scf.if %98 {
      %c0_26 = arith.constant 0 : index
      %c0_27 = arith.constant 0 : index
      %99 = vector.load %arg5[%c0_26, %c0_27] : memref<32x128xf32, #tpu.memory_space<vmem>>, vector<32x128xf32>
      %cst_28 = arith.constant dense<0.000000e+00> : vector<2x128xf32>
      %100 = tpu.matmul %93, %99, %cst_28 {dimension_numbers = #tpu.dot_dimension_numbers<[1], [0], [0], [1], [0, 0, 1, 1], [], []>} : vector<2x32xf32>, vector<32x128xf32>, vector<2x128xf32> -> vector<2x128xf32>
      %c0_29 = arith.constant 0 : index
      %c0_30 = arith.constant 0 : index
      %101 = vector.load %arg6[%c0_29, %c0_30] : memref<1x128xf32, #tpu.memory_space<vmem>>, vector<1x128xf32>
      %102 = vector.broadcast %101 : vector<1x128xf32> to vector<2x128xf32>
      %103 = arith.addf %100, %102 : vector<2x128xf32>
      %cst_31 = arith.constant dense<0xFF800000> : vector<2xf32>
      %104 = vector.multi_reduction <maximumf>, %103, %cst_31 [1] : vector<2x128xf32> to vector<2xf32>
      %105 = vector.shape_cast %104 : vector<2xf32> to vector<2x1xf32>
      %106 = vector.broadcast %105 : vector<2x1xf32> to vector<2x128xf32>
      %107 = arith.subf %103, %106 : vector<2x128xf32>
      %108 = math.exp %107 : vector<2x128xf32>
      %cst_32 = arith.constant dense<0.000000e+00> : vector<2xf32>
      %109 = vector.multi_reduction <add>, %108, %cst_32 [1] : vector<2x128xf32> to vector<2xf32>
      %110 = vector.shape_cast %109 : vector<2xf32> to vector<2x1xf32>
      %111 = math.log %110 : vector<2x1xf32>
      %112 = vector.broadcast %111 : vector<2x1xf32> to vector<2x128xf32>
      %113 = arith.subf %107, %112 : vector<2x128xf32>
      %c0_33 = arith.constant 0 : index
      %c0_34 = arith.constant 0 : index
      %114 = vector.load %arg7[%c0_33, %c0_34] : memref<2x128xf32, #tpu.memory_space<vmem>>, vector<2x128xf32>
      tpu.vector_store %arg7[%c0_33, %c0_34], %113 {strides = array<i32>} : memref<2x128xf32, #tpu.memory_space<vmem>>, vector<2x128xf32>,
    } else {
    }
    return
  }
  func.func @transform_0(%arg0: i32) -> (i32, i32, i32) {
    %c0_i32 = arith.constant 0 : i32
    %c0_i32_0 = arith.constant 0 : i32
    %c0_i32_1 = arith.constant 0 : i32
    return %arg0, %c0_i32, %c0_i32_0 : i32, i32, i32
  }
  func.func @transform_1(%arg0: i32) -> (i32, i32) {
    %c0_i32 = arith.constant 0 : i32
    %c0_i32_0 = arith.constant 0 : i32
    %c0_i32_1 = arith.constant 0 : i32
    return %c0_i32, %c0_i32_0 : i32, i32
  }
  func.func @transform_2(%arg0: i32) -> (i32, i32) {
    %c0_i32 = arith.constant 0 : i32
    %c0_i32_0 = arith.constant 0 : i32
    %c0_i32_1 = arith.constant 0 : i32
    return %c0_i32, %c0_i32_0 : i32, i32
  }
  func.func @transform_3(%arg0: i32) -> (i32, i32) {
    %c0_i32 = arith.constant 0 : i32
    %c0_i32_0 = arith.constant 0 : i32
    %c0_i32_1 = arith.constant 0 : i32
    return %c0_i32, %c0_i32_0 : i32, i32
  }
  func.func @transform_4(%arg0: i32) -> (i32, i32) {
    %c0_i32 = arith.constant 0 : i32
    %c0_i32_0 = arith.constant 0 : i32
    %c0_i32_1 = arith.constant 0 : i32
    return %c0_i32, %c0_i32_0 : i32, i32
  }
  func.func @transform_5(%arg0: i32) -> (i32, i32) {
    %c0_i32 = arith.constant 0 : i32
    %c0_i32_0 = arith.constant 0 : i32
    %c0_i32_1 = arith.constant 0 : i32
    return %c0_i32, %c0_i32_0 : i32, i32
  }
  func.func @transform_6(%arg0: i32) -> (i32, i32) {
    %c0_i32 = arith.constant 0 : i32
    %c0_i32_0 = arith.constant 0 : i32
    %c0_i32_1 = arith.constant 0 : i32
    return %c0_i32, %c0_i32_0 : i32, i32
  }
}

</mosaic_0001>

<bundles_post_ra>
// kernel: tpu_custom_call.1
= control target key start
LH: loop header
LB: loop body
LE: loop exit
PB: predicated region body
PF: predicated region fallthrough
CT: control target
= control target key end

     0   :  { %11 = vsyncpa [#allocation5], 0  ;;  %s1929_s0 = inlined_call_operand.hbm [shape: f32[8,2,16], index: 0, kind: input, shape index: {}]   ;;  %s1930_s1 = inlined_call_operand.hbm [shape: f32[16,128], index: 1, kind: input, shape index: {}]   ;;  %s1931_s2 = inlined_call_operand.hbm [shape: f32[32,128], index: 2, kind: input, shape index: {}]   ;;  %s1932_s3 = inlined_call_operand.vmem [shape: f32[1,128], index: 3, kind: input, shape index: {}]   ;;  %s1933_s4 = inlined_call_operand.hbm [shape: f32[32,128], index: 4, kind: input, shape index: {}]   ;;  %s1934_s5 = inlined_call_operand.vmem [shape: f32[1,128], index: 5, kind: input, shape index: {}]   ;;  %s1935_s6 = inlined_call_operand.hbm [shape: f32[2,128], index: 6, kind: output, shape index: {}]  }
   0x1   :  { %13 = vsyncpa [#allocation5 + $0x1], 0 }
   0x2   :  { %14 = vsyncpa [#allocation8], 0 }
   0x3   :  { %15 = vsyncpa [#allocation11], 0 }
   0x4   :  { %16 = vsyncpa [#allocation6], 0  ;;  %s1616_s21 = smov 0   ;;  %s1618_s22 = smov 0  }
   0x5   :  { %s1620_s23 = smov 0   ;;  %s1622_s24 = smov 0  }
   0x6 LB: > { %s1635_s25 = sadd.s32 4294967295, %s1559_s24   ;;  %p42_p0 = scmp.ne.s32.totalorder %s1551_s22, %s1547_s21  ;;  %s1559_s24 = sphi %s1622_s24, %s1954_s24   ;;  %s1555_s23 = sphi %s1620_s23, %s1953_s23   ;;  %s1551_s22 = sphi %s1618_s22, %s1952_s22   ;;  %s1547_s21 = sphi %s1616_s21, %s1951_s21  }
   0x7   : > { %p1936_p1 = scmp.eq.s32.totalorder %s1635_s25, 0  ;;  %p1089_p2 = scmp.ge.s32.totalorder %s1559_s24, 1 }
   0x8   : > { %p179_p3 = scmp.lt.s32.totalorder %s1559_s24, 3  ;;  %s1561_s28 = smov [#allocation7]  }
   0x9   : > { %p1644_p5 = por %p1936_p1, %p42_p0  ;;  %s191_s29 = sshll.u32 %s1561_s28, 4  ;;  %s1652_s29 = int_to_ptr.vmem [resolvable:$true] %s191_s29 }
   0xa   : > { %p1648_p6 = pnand %p1089_p2, %p179_p3  ;;  %s1562_s7 = smov [#allocation9]  }
   0xb   : > { %s1939_s26 = scalar_select %p1644_p5, 1, 0 }
   0xc   : > { %s1940_s27 = scalar_select %p1648_p6, 1, 0 }
   0xd   : > { %p1263_p7 = pneg %p1648_p6  ;;  %s204_s8 = sshll.u32 %s1562_s7, 4  ;;  %s1662_s8 = int_to_ptr.vmem [resolvable:$true] %s204_s8 }
   0xe   : > { %s1563_s9 = smov [#allocation10]   ;;  %s1373_s13 = scalar_lea.hbm %s1930_s1, 256 }
   0xf   : > { %p1658_p8 = pnand %p1263_p7, %p1936_p1  ;;  %s1664_s10 = sshll.u32 %s1563_s9, 4  ;;  %s221_s10 = int_to_ptr.vmem [resolvable:$true] %s1664_s10 }
  0x10   : > { %p1374_p9 = scmp.ne.s32.totalorder %s1930_s1, %s1373_s13  ;;  %p1380_p13 = scmp.lt.u32.totalorder %s1373_s13, %s1930_s1 }
  0x11   : > { %p1674_p10 = pneg %p1658_p8 }
  0x13   : > { %p1376_p11 = pnand %p1674_p10, %p1374_p9 }
  0x15   : > { %p1377_p12 = pneg %p1376_p11 }
  0x17   : > { %p1382_p0 = pnand %p1380_p13, %p1377_p12 }
  0x19   : > { %1385 = shalt.err (!%p1382_p0)
}
  0x1a   : > { %s1386_s19 = scalar_lea.vmem %s1652_s29, 256  ;;  %p1394_p4 = scmp.lt.s32.totalorder %s1652_s29, %s1652_s29 }
  0x1b   : > { %p1387_p2 = scmp.ne.s32.totalorder %s1652_s29, %s1386_s19  ;;  %p1395_p1 = scmp.lt.s32.totalorder %s1386_s19, %s1386_s19 }
  0x1d   : > { %p1389_p3 = pnand %p1387_p2, %p1674_p10  ;;  %p1396_p9 = por %p1395_p1, %p1394_p4 }
  0x1f   : > { %p1390_p7 = pneg %p1389_p3 }
  0x21   : > { %p1397_p11 = pnand %p1396_p9, %p1390_p7 }
  0x23   : > { %1400 = shalt.err (!%p1397_p11)
}
  0x24   : > { %s1564_s20 = smov 128   ;;  %s1565_s21 = smov 8  }
  0x25   : > { %1266 = dma.hbm_to_vmem [thread:$0]  (!%p1658_p8), %s1930_s1, 256, %s1652_s29, [#allocation8], %s1564_s20, %s1564_s20, %s1565_s21  }
  0x26   : > { %s1401_s12 = scalar_lea.hbm %s1931_s2, 512 }
  0x27   : > { %p1402_p1 = scmp.ne.s32.totalorder %s1931_s2, %s1401_s12  ;;  %p1408_p13 = scmp.lt.u32.totalorder %s1401_s12, %s1931_s2 }
  0x29   : > { %p1404_p4 = pnand %p1402_p1, %p1674_p10 }
  0x2b   : > { %p1405_p12 = pneg %p1404_p4 }
  0x2d   : > { %p1410_p0 = pnand %p1408_p13, %p1405_p12 }
  0x2f   : > { %1413 = shalt.err (!%p1410_p0)
}
  0x30   : > { %s1414_s29 = scalar_lea.vmem %s1662_s8, 512  ;;  %p1422_p9 = scmp.lt.s32.totalorder %s1662_s8, %s1662_s8 }
  0x31   : > { %p1415_p2 = scmp.ne.s32.totalorder %s1662_s8, %s1414_s29  ;;  %p1423_p11 = scmp.lt.s32.totalorder %s1414_s29, %s1414_s29 }
  0x33   : > { %p1417_p3 = pnand %p1415_p2, %p1674_p10  ;;  %p1424_p1 = por %p1423_p11, %p1422_p9 }
  0x35   : > { %p1418_p7 = pneg %p1417_p3 }
  0x37   : > { %p1425_p4 = pnand %p1424_p1, %p1418_p7 }
  0x39   : > { %1428 = shalt.err (!%p1425_p4)
}
  0x3a   : > { %1269 = dma.hbm_to_vmem [thread:$0]  (!%p1658_p8), %s1931_s2, 512, %s1662_s8, [#allocation8], %s1564_s20, %s1564_s20, %s1565_s21  }
  0x3b   : > { %s1429_s9 = scalar_lea.hbm %s1933_s4, 512 }
  0x3c   : > { %p1430_p12 = scmp.ne.s32.totalorder %s1933_s4, %s1429_s9  ;;  %p1436_p2 = scmp.lt.u32.totalorder %s1429_s9, %s1933_s4 }
  0x3e   : > { %p1432_p13 = pnand %p1430_p12, %p1674_p10 }
  0x40   : > { %p1433_p0 = pneg %p1432_p13 }
  0x42   : > { %p1438_p3 = pnand %p1436_p2, %p1433_p0 }
  0x44   : > { %1441 = shalt.err (!%p1438_p3)
}
  0x45   : > { %s1442_s15 = scalar_lea.vmem %s221_s10, 512  ;;  %p1450_p1 = scmp.lt.s32.totalorder %s221_s10, %s221_s10 }
  0x46   : > { %p1443_p7 = scmp.ne.s32.totalorder %s221_s10, %s1442_s15  ;;  %p1451_p4 = scmp.lt.s32.totalorder %s1442_s15, %s1442_s15 }
  0x48   : > { %p1445_p9 = pnand %p1443_p7, %p1674_p10  ;;  %p1452_p5 = por %p1451_p4, %p1450_p1 }
  0x4a   : > { %p1446_p11 = pneg %p1445_p9 }
  0x4c   : > { %p1453_p6 = pnand %p1452_p5, %p1446_p11 }
  0x4e   : > { %1456 = shalt.err (!%p1453_p6)
}
  0x4f   : > { %1272 = dma.hbm_to_vmem [thread:$0]  (!%p1658_p8), %s1933_s4, 512, %s221_s10, [#allocation11], %s1564_s20, %s1564_s20, %s1565_s21  }
  0x50   : > { %s1747_s16 = sadd.s32 1, %s1559_s24   ;;  %s29_s29 = sadd.s32 1, %s1555_s23 }
  0x51   : > { %s26_s30 = ssub.s32 %s1559_s24, %s1747_s16  ;;  %p36_p6 = scmp.ne.s32.totalorder %s1555_s23, %s1551_s22 }
  0x52   : > { %p27_p5 = scmp.eq.s32.totalorder %s26_s30, 0  ;;  %p37_p10 = scmp.eq.s32.totalorder %s1559_s24, 0 }
  0x53   : > { %p1280_p12 = scmp.lt.s32.totalorder %s1559_s24, 2  ;;  %s237_s19 = sand.u32 1, %s1555_s23  }
  0x54   : > { %s1757_s18 = scalar_select %p27_p5, %s1555_s23, %s29_s29  }
  0x55   : > { %p38_p13 = por %p37_p10, %p36_p6  ;;  %s1094_s28 = sshll.u32 %s237_s19, 3 }
  0x56   : > { %s1121_s7 = sshll.u32 %s1559_s24, 7  ;;  %s241_s10 = scalar_lea.vmem [#allocation4], %s1094_s28 }
  0x57   : > { %s1764_s12 = scalar_lea.hbm %s1929_s0, %s1121_s7  ;;  %s248_s20 = sshll.u32 %s241_s10, 4  ;;  %s1766_s20 = int_to_ptr.vmem [resolvable:$true] %s248_s20 }
  0x58   : > { %p1768_p8 = pnand %p1280_p12, %p38_p13  ;;  %s1772_s24 = scalar_lea.sflag [#allocation5], %s237_s19 }
  0x59   : > { %s1457_s13 = scalar_lea.hbm %s1764_s12, 128  ;;  %s1462_s8 = scalar_lea.hbm %s1929_s0, 256 }
  0x5a   : > { %p1458_p0 = scmp.ne.s32.totalorder %s1764_s12, %s1457_s13  ;;  %p1459_p2 = pneg %p1768_p8 }
  0x5b   : > { %p1463_p9 = scmp.lt.u32.totalorder %s1764_s12, %s1929_s0  ;;  %p1464_p11 = scmp.lt.u32.totalorder %s1462_s8, %s1457_s13 }
  0x5c   : > { %p1460_p3 = pnand %p1459_p2, %p1458_p0  ;;  %p1466_p4 = scmp.lt.u32.totalorder %s1457_s13, %s1764_s12 }
  0x5d   : > { %p1465_p1 = por %p1464_p11, %p1463_p9 }
  0x5e   : > { %p1461_p7 = pneg %p1460_p3 }
  0x5f   : > { %p1467_p5 = por %p1466_p4, %p1465_p1 }
  0x61   : > { %p1468_p6 = pnand %p1467_p5, %p1461_p7 }
  0x63   : > { %1471 = shalt.err (!%p1468_p6)
}
  0x64   : > { %s1472_s29 = scalar_lea.vmem %s1766_s20, 128  ;;  %s1566_s19 = smov [#allocation4]  }
  0x65   : > { %p1473_p10 = scmp.ne.s32.totalorder %s1766_s20, %s1472_s29  ;;  %s1477_s28 = sshll.u32 %s1566_s19, 4  ;;  %s1478_s28 = int_to_ptr.vmem [resolvable:$false] %s1477_s28 }
  0x66   : > { %s1479_s7 = scalar_lea.vmem %s1478_s28, 256  ;;  %p1480_p0 = scmp.lt.s32.totalorder %s1766_s20, %s1478_s28 }
  0x67   : > { %p1475_p12 = pnand %p1473_p10, %p1459_p2  ;;  %p1481_p3 = scmp.lt.s32.totalorder %s1479_s7, %s1472_s29 }
  0x69   : > { %p1476_p13 = pneg %p1475_p12  ;;  %p1482_p9 = por %p1481_p3, %p1480_p0 }
  0x6b   : > { %p1483_p11 = pnand %p1482_p9, %p1476_p13 }
  0x6d   : > { %1486 = shalt.err (!%p1483_p11)
}
  0x6e   : > { %s1567_s9 = smov 32   ;;  %s1568_s11 = smov 2  }
  0x6f   : > { %1276 = dma.hbm_to_vmem [thread:$0]  (!%p1768_p8), %s1764_s12, 128, %s1766_s20, %s1772_s24, %s1567_s9, %s1567_s9, %s1568_s11  }
  0x70   : > { %p1944_p2 = scmp.ne.s32.totalorder %s1940_s27, 0 }
  0x71   : > { %s262_s10 = sand.u32 (!%p1944_p2), 1, %s1551_s22   ;;  %p1945_p7 = scmp.ne.s32.totalorder (!%p1944_p2), %s1939_s26, 0 }
  0x72   : > { %260 = sbr.rel (%p1944_p2) target bundleno = 3526 (0xdc6), region = 44  ;;  %s1098_s13 = sshll.u32 (!%p1944_p2), %s262_s10, 3 }
  0x73   : > { %s263_s14 = scalar_lea.sflag (!%p1944_p2), [#allocation5], %s262_s10  ;;  %s266_s15 = scalar_lea.vmem (!%p1944_p2), [#allocation4], %s1098_s13 }
  0x79   : > { %1530 = dma.done.wait (%p1945_p7), %s263_s14, 128  }
  0x7a   : > { %1532 = vsyncadd (%p1945_p7), %s263_s14, 4294967168  ;;  %p1946_p1 = scmp.eq.s32.totalorder %s1635_s25, 0 }
  0x7c   : > { %1534 = dma.done.wait (%p1946_p1), [#allocation8], 768   ;;  %p1947_p4 = pmov %p1946_p1 }
  0x7d   : > { %p1948_p8 = pmov %p1946_p1 }
  0x7e   : > { %1536 = vsyncadd (%p1947_p4), [#allocation8], 4294966528 }
  0x7f   : > { %1538 = dma.done.wait (%p1948_p8), [#allocation11], 512   ;;  %p1949_p5 = pmov %p1946_p1 }
  0x80   : > { %p1950_p6 = scmp.ne.s32.totalorder %s1635_s25, 0 }
  0x81   : > { %1540 = vsyncadd (%p1949_p5), [#allocation11], 4294966784  ;;  %vm307_vm0 = vcmask (!%p1950_p6), 254976   ;;  %v1569_v0 = vmov (!%p1950_p6), 0.0  }
  0x82   : > { %306 = sbr.rel (%p1950_p6) target bundleno = 137 (0x89), region = 64  ;;  %308 = vst.msk [vmem:[#allocation2] sm:$0x3] (!%p1950_p6), %vm307_vm0, %v1569_v0  ;;  %309 = vst.msk [vmem:[#allocation3] sm:$0x3] (!%p1950_p6), %vm307_vm0, %v1569_v0 }
  0x89 PF: > { %v439_v1 = vld [vmem:[#allocation9] sm:$0xff]  ;;  %v440_v2 = vld [vmem:[#allocation9 + $0x8] sm:$0xff]  ;;  %v314_v3 = vld [vmem:[#allocation7] sm:$0xff]  ;;  %v332_v4 = vlaneseq  ;;  %v1570_v5 = vmov 0.0|0.0   ;;  %vm1571_vm1 = vmmov 0   ;;  %v1572_v11 = vmov 0.0  }
  0x8a   : > { %1215 = vmatprep.subr.bf16.mxu1 %v1570_v5  ;;  %1212 = vmatprep.subr.bf16.mxu0 %v1570_v5  ;;  %v1819_v6 = vpack.c.bf16 %v440_v2, %v439_v1  ;;  %v315_v7 = vld [vmem:[#allocation7 + $0x8] sm:$0xff]  ;;  %v310_v8 = vld [vmem:[%s266_s15] sm:$0x3]  ;;  %v311_v9 = vld [vmem:[%s266_s15 + $0x2] sm:$0x3]  ;;  %vm445_vm2 = vcmask 261120  }
  0x8b   : > { %v1213_v10 = vpack.c.bf16 %v315_v7, %v314_v3  ;;  %1154 = vmatprep.mubr.msk.f32.mxu0 %vm1571_vm1, %v1572_v11  ;;  %v312_v12 = vld [vmem:[%s266_s15 + $0x4] sm:$0x3]  ;;  %v313_v13 = vld [vmem:[%s266_s15 + $0x6] sm:$0x3]  ;;  %1165 = vmatprep.mubr.msk.f32.mxu1 %vm1571_vm1, %v1572_v11  ;;  %v1573_v14 = vmov 1983009808   ;;  %v327_v20 = vcombine.low %v310_v8, %v311_v9 }
  0x8c   : > { %1217 = vmatpush3.bf16.msra.mxu1 %v1819_v6  ;;  %v330_v15 = vunpack.c.l.s4 %v1573_v14  ;;  %v333_v16 = vshrl.u32 %v332_v4, 7  ;;  %v441_v17 = vld [vmem:[#allocation9 + $0x10] sm:$0xff]  ;;  %v442_v18 = vld [vmem:[#allocation9 + $0x18] sm:$0xff]  ;;  %v328_v21 = vcombine.low %v312_v12, %v313_v13  ;;  %vm344_vm3 = vcmask 130048   ;;  %s1574_s12 = smov 32   ;;  %s1575_s20 = smov 64  }
  0x8d   : > { %1214 = vmatpush3.bf16.msra.mxu0 %v1213_v10  ;;  %1218 = vmatprep.subr.bf16.mxu1 %v1570_v5  ;;  %v1827_v19 = vpack.c.bf16 %v442_v18, %v441_v17  ;;  %v443_v24 = vld [vmem:[#allocation2] sm:$0x3]  ;;  %v1107_v37 = vld.sshfl [vmem:[#allocation3] sm:$0x3 pattern:$0x76325410] }
  0x8e   : > { %v331_v22 = vunpack.c.0.s8 %v330_v15  ;;  %1221 = vmatprep.subr.bf16.mxu0 %v1570_v5  ;;  %v1103_v29 = vld [vmem:[%s1932_s3] ss:$0 sm:$0xff]  ;;  %s1576_s21 = smov 96   ;;  %vm887_vm4 = vcmask 254976   ;;  %p1114_p10 = scmp.ne.s32.totalorder %s1635_s25, 1 }
  0x8f   : > { %vm1578_vm5 = vmmov (!%p1114_p10), 0   ;;  %vm988_vm6 = vcmask (!%p1114_p10), 1041408  }
  0x90   : > { %v1830_v23 = vsub.s32 %v331_v22, %v333_v16  ;;  %1220 = vmatpush3.bf16.msra.mxu1 %v1827_v19 }
  0x91   : > { %1227 = vmatprep.subr.bf16.mxu1 %v1570_v5 }
  0x92   : > { %v335_v25 = vrot.slane %v327_v20, %v1830_v23  ;;  %v342_v26 = vrot.slane %v328_v21, %v1830_v23 }
  0x93   : > { %1166 = vmatmul.mubr.msk.f32.vlgmr.msra.gmra.mrb[0].mxu1 %vm445_vm2, %v443_v24 }
  0x94   : > { %v343_v27 = vcombine.low %v335_v25, %v342_v26  ;;  %1229 = vmatpush3.bf16.msra.mxu1 %v1819_v6  ;;  %1187 = vmatprep.mubr.msk.f32.mxu1 %vm1571_vm1, %v1572_v11 }
  0x95   : > { %1230 = vmatprep.subr.bf16.mxu1 %v1570_v5 }
  0x96   : > { %1155 = vmatmul.mubr.msk.f32.vlgmr.msra.gmra.mrb[0].mxu0 %vm344_vm3, %v343_v27 }
  0x97   : > { %1223 = vmatpush3.bf16.msra.mxu0 %v1819_v6  ;;  %1176 = vmatprep.mubr.msk.f32.mxu0 %vm1571_vm1, %v1572_v11 }
  0x98   : > { %1224 = vmatprep.subr.bf16.mxu0 %v1570_v5  ;;  %1232 = vmatpush3.bf16.msra.mxu1 %v1827_v19 }
  0x9b   : > { %1226 = vmatpush3.bf16.msra.mxu0 %v1827_v19 }
  0x9c   : > { %1233 = vmatprep.subr.bf16.mxu0 %v1570_v5 }
 0x166   : > { %v515_v28 = vpop.f32.mrb[0].mxu1 }
 0x167   : > { %v1167_v30 = vpop.f32.mrb[1].mxu1 }
 0x169   : > { %v413_v31 = vpop.f32.mrb[0].mxu0 }
 0x16a   : > { %v1851_v32 = vadd.f32 %v1103_v29, %v413_v31  ;;  %v1156_v33 = vpop.f32.mrb[1].mxu0 }
 0x16c   : > { %v425_v34 = vrot.slane %v1851_v32, %v1830_v23  ;;  %v418_v8 = vcombine.high %v1851_v32, %v1851_v32 }
 0x16e   : > { %v519_v35 = vadd.f32 %v515_v28, %v425_v34  ;;  %v433_v53 = vcombine.high %v425_v34, %v425_v34  ;;  %v432_v9 = vrot.slane %v418_v8, %v1830_v23 }
 0x170   : > { %1337 = vtanh.f32 %v519_v35  ;;  %v1106_v38 = vmul.f32 -1.442695, %v519_v35  ;;  %v434_v29 = vcombine.high %v432_v9, %v432_v9 }
 0x172   : > { %1339 = vpow2.f32 %v1106_v38 }
 0x17a   : > { %v1338_v36 = vpop.eup %1337 }
 0x17b   : > { %540 = vrot.lane.b32.xlu0 %v1338_v36, %s1574_s12 }
 0x17c   : > { %v1340_v39 = vpop.eup %1339 }
 0x17d   : > { %v523_v40 = vadd.f32 1.0, %v1340_v39 }
 0x17f   : > { %535 = vrot.lane.b32.xlu0 %v1107_v37, %s1574_s12  ;;  %1341 = vrcp.f32 %v523_v40 }
 0x189   : > { %v1342_v41 = vpop.eup %1341 }
 0x1ed   : > { %v541_v42 = vpop.permute.xlu0 %540 }
 0x1ee   : > { %v543_v43 = vmul.f32 %v1342_v41, %v541_v42 }
 0x1f0   : > { %545 = vrot.lane.b32.xlu1 %v543_v43, %s1574_s12 }
 0x1f1   : > { %v536_v44 = vpop.permute.xlu0 %535 }
 0x1f2   : > { %v538_v45 = vmul.f32 %v1342_v41, %v536_v44 }
 0x262   : > { %v546_v46 = vpop.permute.xlu1 %545 }
 0x263   : > { %v548_v47 = vadd.f32 %v546_v46, %v538_v45 }
 0x265   : > { %1343 = vtanh.f32 %v548_v47 }
 0x26f   : > { %v1344_v48 = vpop.eup %1343 }
 0x270   : > { %551 = vrot.lane.b32.xlu1 %v1344_v48, %s1574_s12 }
 0x2e2   : > { %v552_v49 = vpop.permute.xlu1 %551 }
 0x2e3   : > { %v554_v50 = vmul.f32 %v1342_v41, %v552_v49 }
 0x2e5   : > { %v562_v51 = vrot.slane %v554_v50, %v1830_v23  ;;  %v905_v50 = vld [vmem:[#allocation10] sm:$0xff] (!%p1114_p10) }
 0x2e7   : > { %563 = vrot.lane.b32.xlu0 %v562_v51, %s1575_s20  ;;  %v906_v51 = vld [vmem:[#allocation10 + $0x8] sm:$0xff] (!%p1114_p10) }
 0x359   : > { %v564_v52 = vpop.permute.xlu0 %563 }
 0x35a   : > { %1177 = vmatmul.mubr.msk.f32.vlgmr.msra.gmra.mrb[2].mxu0 %vm445_vm2, %v564_v52  ;;  %v907_v52 = vld [vmem:[#allocation10 + $0x10] sm:$0xff] (!%p1114_p10) }
 0x35b   : > { %1235 = vmatpush3.bf16.msra.mxu0 %v1819_v6  ;;  %1198 = vmatprep.mubr.msk.f32.mxu0 %vm1571_vm1, %v1572_v11 }
 0x35c   : > { %1236 = vmatprep.subr.bf16.mxu0 %v1570_v5 }
 0x35f   : > { %1238 = vmatpush3.bf16.msra.mxu0 %v1827_v19 }
 0x42d   : > { %v633_v54 = vpop.f32.mrb[2].mxu0 }
 0x42e   : > { %v637_v55 = vadd.f32 %v633_v54, %v433_v53  ;;  %v1178_v56 = vpop.f32.mrb[3].mxu0  ;;  %v1577_v53 = vmov (!%p1114_p10), 0.0|0.0   ;;  %v1240_v54 = vpack.c.bf16 (!%p1114_p10), %v906_v51, %v905_v50 }
 0x42f   : > { %1239 = vmatprep.subr.bf16.mxu0 (!%p1114_p10), %v1577_v53  ;;  %v1579_v56 = vmov (!%p1114_p10), 0.0  }
 0x430   : > { %1345 = vtanh.f32 %v637_v55  ;;  %v1109_v58 = vmul.f32 -1.442695, %v637_v55  ;;  %v908_v55 = vld [vmem:[#allocation10 + $0x18] sm:$0xff] (!%p1114_p10) }
 0x432   : > { %1347 = vpow2.f32 %v1109_v58 }
 0x43a   : > { %v1346_v57 = vpop.eup %1345 }
 0x43b   : > { %647 = vrot.lane.b32.xlu1 %v1346_v57, %s1574_s12  ;;  %v1115_v57 = vld [vmem:[%s1934_s5] ss:$0 sm:$0xff] (!%p1114_p10) }
 0x43c   : > { %v1348_v59 = vpop.eup %1347 }
 0x43d   : > { %v641_v60 = vadd.f32 1.0, %v1348_v59 }
 0x43f   : > { %1349 = vrcp.f32 %v641_v60 }
 0x449   : > { %v1350_v61 = vpop.eup %1349 }
 0x44a   : > { %v645_v0 = vmul.f32 %v1350_v61, %v548_v47 }
 0x4ad   : > { %v648_v62 = vpop.permute.xlu1 %647 }
 0x4ae   : > { %v650_v63 = vmul.f32 %v1350_v61, %v648_v62 }
 0x4b0   : > { %652 = vrot.lane.b32.xlu0 %v650_v63, %s1574_s12 }
 0x522   : > { %v653_v1 = vpop.permute.xlu0 %652 }
 0x523   : > { %v655_v2 = vadd.f32 %v653_v1, %v645_v0 }
 0x525   : > { %1351 = vtanh.f32 %v655_v2 }
 0x52f   : > { %v1352_v3 = vpop.eup %1351 }
 0x530   : > { %658 = vrot.lane.b32.xlu1 %v1352_v3, %s1574_s12 }
 0x5a2   : > { %v659_v4 = vpop.permute.xlu1 %658 }
 0x5a3   : > { %v661_v5 = vmul.f32 %v1350_v61, %v659_v4 }
 0x5a5   : > { %v669_v6 = vrot.slane %v661_v5, %v1830_v23 }
 0x5a7   : > { %670 = vrot.lane.b32.xlu0 %v669_v6, %s1575_s20 }
 0x619   : > { %v671_v7 = vpop.permute.xlu0 %670 }
 0x61a   : > { %1188 = vmatmul.mubr.msk.f32.vlgmr.msra.gmra.mrb[2].mxu1 %vm445_vm2, %v671_v7 }
 0x6ed   : > { %v740_v10 = vpop.f32.mrb[2].mxu1 }
 0x6ee   : > { %v744_v11 = vadd.f32 %v740_v10, %v432_v9  ;;  %v1189_v12 = vpop.f32.mrb[3].mxu1 }
 0x6f0   : > { %1353 = vtanh.f32 %v744_v11  ;;  %v1111_v14 = vmul.f32 -1.442695, %v744_v11 }
 0x6f2   : > { %1355 = vpow2.f32 %v1111_v14 }
 0x6fa   : > { %v1354_v13 = vpop.eup %1353 }
 0x6fb   : > { %754 = vrot.lane.b32.xlu1 %v1354_v13, %s1574_s12 }
 0x6fc   : > { %v1356_v15 = vpop.eup %1355 }
 0x6fd   : > { %v748_v16 = vadd.f32 1.0, %v1356_v15 }
 0x6ff   : > { %1357 = vrcp.f32 %v748_v16 }
 0x709   : > { %v1358_v17 = vpop.eup %1357 }
 0x70a   : > { %v752_v20 = vmul.f32 %v1358_v17, %v655_v2 }
 0x76d   : > { %v755_v18 = vpop.permute.xlu1 %754 }
 0x76e   : > { %v757_v19 = vmul.f32 %v1358_v17, %v755_v18 }
 0x770   : > { %759 = vrot.lane.b32.xlu0 %v757_v19, %s1574_s12 }
 0x7e2   : > { %v760_v21 = vpop.permute.xlu0 %759 }
 0x7e3   : > { %v762_v22 = vadd.f32 %v760_v21, %v752_v20 }
 0x7e5   : > { %1359 = vtanh.f32 %v762_v22 }
 0x7ef   : > { %v1360_v24 = vpop.eup %1359 }
 0x7f0   : > { %765 = vrot.lane.b32.xlu1 %v1360_v24, %s1574_s12 }
 0x862   : > { %v766_v25 = vpop.permute.xlu1 %765 }
 0x863   : > { %v768_v26 = vmul.f32 %v1358_v17, %v766_v25 }
 0x865   : > { %v776_v27 = vrot.slane %v768_v26, %v1830_v23 }
 0x867   : > { %777 = vrot.lane.b32.xlu0 %v776_v27, %s1575_s20 }
 0x8d9   : > { %v778_v28 = vpop.permute.xlu0 %777 }
 0x8da   : > { %1199 = vmatmul.mubr.msk.f32.vlgmr.msra.gmra.mrb[4].mxu0 %vm445_vm2, %v778_v28 }
 0x8db   : > { %1209 = vmatprep.mubr.msk.f32.mxu0 (!%p1114_p10), %vm1578_vm5, %v1579_v56  ;;  %1241 = vmatpush3.bf16.msra.mxu0 (!%p1114_p10), %v1240_v54 }
 0x8dc   : > { %1242 = vmatprep.subr.bf16.mxu0 (!%p1114_p10), %v1577_v53 }
 0x9ad   : > { %v847_v30 = vpop.f32.mrb[4].mxu0 }
 0x9ae   : > { %v851_v31 = vadd.f32 %v847_v30, %v434_v29  ;;  %v1200_v32 = vpop.f32.mrb[5].mxu0 }
 0x9b0   : > { %1361 = vtanh.f32 %v851_v31  ;;  %v1113_v34 = vmul.f32 -1.442695, %v851_v31 }
 0x9b2   : > { %1363 = vpow2.f32 %v1113_v34 }
 0x9ba   : > { %v1362_v33 = vpop.eup %1361 }
 0x9bb   : > { %861 = vrot.lane.b32.xlu1 %v1362_v33, %s1574_s12 }
 0x9bc   : > { %v1364_v35 = vpop.eup %1363 }
 0x9bd   : > { %v855_v36 = vadd.f32 1.0, %v1364_v35 }
 0x9bf   : > { %1365 = vrcp.f32 %v855_v36 }
 0x9c9   : > { %v1366_v37 = vpop.eup %1365 }
 0x9ca   : > { %v859_v40 = vmul.f32 %v1366_v37, %v762_v22 }
 0xa2d   : > { %v862_v38 = vpop.permute.xlu1 %861 }
 0xa2e   : > { %v864_v39 = vmul.f32 %v1366_v37, %v862_v38 }
 0xa30   : > { %866 = vrot.lane.b32.xlu0 %v864_v39, %s1574_s12 }
 0xaa2   : > { %v867_v41 = vpop.permute.xlu0 %866 }
 0xaa3   : > { %v869_v42 = vadd.f32 %v867_v41, %v859_v40 }
 0xaa5   : > { %1367 = vtanh.f32 %v869_v42  ;;  %v896_v44 = vrot.slane %v869_v42, %v1830_v23 }
 0xaaf   : > { %v1368_v43 = vpop.eup %1367 }
 0xab0   : > { %872 = vrot.lane.b32.xlu1 %v1368_v43, %s1574_s12 }
 0xab4   : > { %897 = vrot.lane.b32.xlu1 %v896_v44, %s1576_s21 }
 0xb22   : > { %v873_v45 = vpop.permute.xlu1 %872 }
 0xb23   : > { %v875_v46 = vmul.f32 %v1366_v37, %v873_v45 }
 0xb25   : > { %v883_v47 = vrot.slane %v875_v46, %v1830_v23  ;;  %v1243_v23 = vpack.c.bf16 (!%p1114_p10), %v908_v55, %v907_v52 }
 0xb26   : > { %v898_v48 = vpop.permute.xlu1 %897 }
 0xb27   : > { %900 = vst.msk [vmem:[#allocation3] sm:$0x3] %vm887_vm4, %v898_v48  ;;  %884 = vrot.lane.b32.xlu0 %v883_v47, %s1575_s20  ;;  %1244 = vmatpush3.bf16.msra.mxu0 (!%p1114_p10), %v1243_v23 }
 0xb94   : > { %904 = sbr.rel (%p1114_p10) target bundleno = 3501 (0xdad), region = 68 }
 0xb99   : > { %v885_v49 = vpop.permute.xlu0 %884 }
 0xb9a   : > { %888 = vst.msk [vmem:[#allocation2] sm:$0x3] %vm887_vm4, %v885_v49  ;;  %1210 = vmatmul.mubr.msk.f32.vlgmr.msra.gmra.mrb[0].mxu0 (!%p1114_p10), %vm445_vm2, %v885_v49 }
 0xc6d   : > { %v984_v58 = vpop.f32.mrb[0].mxu0 }
 0xc6e   : > { %v985_v59 = vadd.f32 %v1115_v57, %v984_v58  ;;  %v1211_v60 = vpop.f32.mrb[1].mxu0 }
 0xc70   : > { %v989_v61 = vsel %vm988_vm6, %v985_v59, -inf }
 0xc71   : > { %990 = vmax.xlane.f32.xlu0 %v989_v61 }
 0xcfe   : > { %v991_v62 = vpop.xlane.xlu0 %990 }
 0xcff   : > { %v992_v63 = vsub.f32 %v985_v59, %v991_v62 }
 0xd01   : > { %v993_v0 = vmul.f32 1.442695, %v992_v63 }
 0xd03   : > { %1369 = vpow2.f32 %v993_v0 }
 0xd0d   : > { %v1370_v1 = vpop.eup %1369 }
 0xd0e   : > { %v995_v2 = vsel %vm988_vm6, %v1370_v1, 0.0 }
 0xd0f   : > { %996 = vadd.xlane.f32.xlu0 %v995_v2 }
 0xd9c   : > { %v997_v3 = vpop.xlane.xlu0 %996 }
 0xd9d   : > { %1371 = vlog2.f32 %v997_v3 }
 0xda7   : > { %v1372_v4 = vpop.eup %1371 }
 0xda8   : > { %v999_v5 = vmul.f32 0.6931472, %v1372_v4 }
 0xdaa   : > { %v1000_v6 = vsub.f32 %v992_v63, %v999_v5 }
 0xdac   : > { %1001 = vst [vmem:[#allocation12] sm:$0x3] %v1000_v6 }
 0xdad PF: > { %p1284_p12 = scmp.eq.s32.totalorder %s1635_s25, 1  ;;  %s1580_s17 = smov [#allocation12]  }
 0xdae   : > { %s1009_s30 = sshll.u32 %s1580_s17, 4  ;;  %s1010_s30 = int_to_ptr.vmem [resolvable:$true] %s1009_s30 }
 0xdaf   : > { %s1487_s29 = scalar_lea.vmem %s1010_s30, 32  ;;  %p1494_p9 = scmp.lt.s32.totalorder %s1010_s30, %s1010_s30 }
 0xdb0   : > { %p1488_p13 = scmp.ne.s32.totalorder %s1010_s30, %s1487_s29  ;;  %p1495_p11 = scmp.lt.s32.totalorder %s1487_s29, %s1487_s29 }
 0xdb2   : > { %p1489_p0 = pnand %p1488_p13, %p1284_p12  ;;  %p1496_p2 = por %p1495_p11, %p1494_p9 }
 0xdb4   : > { %p1490_p3 = pneg %p1489_p0 }
 0xdb6   : > { %p1497_p7 = pnand %p1496_p2, %p1490_p3 }
 0xdb8   : > { %1500 = shalt.err (!%p1497_p7)
}
 0xdb9   : > { %s1501_s7 = scalar_lea.hbm %s1935_s6, 32 }
 0xdba   : > { %p1502_p1 = scmp.ne.s32.totalorder %s1935_s6, %s1501_s7  ;;  %p1507_p5 = scmp.lt.u32.totalorder %s1501_s7, %s1935_s6 }
 0xdbc   : > { %p1503_p4 = pnand %p1502_p1, %p1284_p12 }
 0xdbe   : > { %p1504_p8 = pneg %p1503_p4 }
 0xdc0   : > { %p1509_p6 = pnand %p1507_p5, %p1504_p8 }
 0xdc2   : > { %1512 = shalt.err (!%p1509_p6)
}
 0xdc3   : > { %1260 = dma.vmem_to_hbm [thread:$0]  (%p1284_p12), %s1010_s30, 32, %s1935_s6, [#allocation6]  }
 0xdc4   : > { %1542 = dma.done.wait (%p1284_p12), [#allocation6], 32  }
 0xdc5   : > { %1544 = vsyncadd (%p1284_p12), [#allocation6], 4294967264 }
 0xdc6 PF: > { %p19_p10 = scmp.ge.s32.totalorder %s1747_s16, 4   ;;  %s1951_s21 = smov %s1551_s22 }
 0xdc7   : > { %s1952_s22 = smov %s1555_s23  ;;  %s1953_s23 = smov %s1757_s18 }
 0xdc8   : > { %s1954_s24 = smov %s1747_s16  ;;  %21 = sbr.rel (!%p19_p10) target bundleno = 6 (0x6), region = 101 }
 0xdcf   :  { %1022 = vsyncpa [#allocation5], 1 }
 0xdd0   :  { %1024 = vsyncpa [#allocation5 + $0x1], 1 }
 0xdd1   :  { %1025 = vsyncpa [#allocation8], 1 }
 0xdd2   :  { %1026 = vsyncpa [#allocation11], 1 }
 0xdd3   :  { %1027 = vsyncpa [#allocation6], 1 }
 0xdd4   :  { %1029 = vsyncpa [#allocation6 + $0x1], 1 }

</bundles_post_ra>
